<compile_context>
chip_gen: v7x
topology: tpu7x:2x2x1
jax: 0.10.0
libtpu: 0.0.40
codegen_flags: <defaults>
</compile_context>

<pallas_src>
import functools

import jax
import jax.numpy as jnp
from jax.experimental import pallas as pl
from jax.experimental.pallas import tpu as pltpu

CHECKERBOARD = 0   # MaskType.CHECKERBOARD
CHANNEL_WISE = 1   # MaskType.CHANNEL_WISE


def _round_up(x, m):
    return ((x + m - 1) // m) * m


# ----------------------------- Pallas kernels ------------------------------

def _mm_kernel(a_ref, w_ref, b_ref, o_ref, *, fuse_relu):
    a = a_ref[...]                                   # bf16 tile
    if fuse_relu:
        a = jnp.maximum(a, 0.0)                      # relu(0)=0 -> safe with zero pad
    acc = jnp.dot(a, w_ref[...], preferred_element_type=jnp.float32)
    o_ref[...] = acc + b_ref[...]


def _mm_affine_kernel(a_ref, sc_ref, sh_ref, w_ref, b_ref, o_ref, *, fuse_relu):
    # fused BatchNorm-normalize (per input column) + optional ReLU prologue
    a = a_ref[...].astype(jnp.float32) * sc_ref[...] + sh_ref[...]
    if fuse_relu:
        a = jnp.maximum(a, 0.0)
    acc = jnp.dot(a.astype(jnp.bfloat16), w_ref[...],
                  preferred_element_type=jnp.float32)
    o_ref[...] = acc + b_ref[...]


def matmul_bias(a, w, bias, *, col_scale=None, col_shift=None, fuse_relu=False):
    """(M, K) @ (K, N) + bias[N], tiled over M with the weight block resident.

    MXU operands are bf16 (halves the A-side HBM traffic), accumulation and the
    bias add stay f32.  Optional per-column affine (+ReLU) prologue folds a
    preceding BatchNorm/ReLU into the A-tile load.
    """
    M, K = a.shape
    _, N = w.shape
    has_affine = col_scale is not None

    # Pick an M tile whose double-buffered working set stays well inside the
    # default scoped-VMEM budget on every generation (v7x has only 64 MiB).
    per_row = 2 * (2 * K + 4 * N)                    # bf16 A + f32 out, 2 buffers
    tm = min(2048, max(8, (8 * 1024 * 1024) // max(per_row, 1)))
    tm = max(8, (tm // 8) * 8)
    tm = min(tm, _round_up(M, 8))
    m_pad = _round_up(M, tm)

    a = a.astype(jnp.bfloat16)
    if m_pad != M:
        a = jnp.pad(a, ((0, m_pad - M), (0, 0)))
    w = w.astype(jnp.bfloat16)
    bias = bias.reshape(1, N).astype(jnp.float32)

    a_spec = pl.BlockSpec((tm, K), lambda i: (i, 0))
    w_spec = pl.BlockSpec((K, N), lambda i: (0, 0))   # resident across M tiles
    b_spec = pl.BlockSpec((1, N), lambda i: (0, 0))
    o_spec = pl.BlockSpec((tm, N), lambda i: (i, 0))

    if has_affine:
        kern = functools.partial(_mm_affine_kernel, fuse_relu=fuse_relu)
        operands = (a,
                    col_scale.reshape(1, K).astype(jnp.float32),
                    col_shift.reshape(1, K).astype(jnp.float32),
                    w, bias)
        in_specs = [a_spec,
                    pl.BlockSpec((1, K), lambda i: (0, 0)),
                    pl.BlockSpec((1, K), lambda i: (0, 0)),
                    w_spec, b_spec]
    else:
        kern = functools.partial(_mm_kernel, fuse_relu=fuse_relu)
        operands = (a, w, bias)
        in_specs = [a_spec, w_spec, b_spec]

    out = pl.pallas_call(
        kern,
        out_shape=jax.ShapeDtypeStruct((m_pad, N), jnp.float32),
        grid=(m_pad // tm,),
        in_specs=in_specs,
        out_specs=o_spec,
        compiler_params=pltpu.CompilerParams(
            dimension_semantics=("parallel",)),
    )(*operands)
    return out[:M] if m_pad != M else out


def _coupling_kernel(sp_ref, x_ref, s_ref, t_ref, omb_ref, o_ref, rs_ref, *,
                     reverse):
    s_scale = sp_ref[0]                              # scalars live in SMEM
    s_shift = sp_ref[1]
    omb = omb_ref[...]                               # (TM, 1) mask column
    s = (s_scale * jnp.tanh(s_ref[...]) + s_shift) * omb
    t = t_ref[...] * omb
    # per-row sum of s feeds the log-det jacobian without a second tanh pass
    rs_ref[...] = jnp.sum(s, axis=-1, keepdims=True)
    if reverse:
        # TODO(synk): torch.isnan check + RuntimeError has no in-kernel equivalent.
        o_ref[...] = x_ref[...] * jnp.exp(-s) - t
    else:
        o_ref[...] = (x_ref[...] + t) * jnp.exp(s)


def coupling_apply(x2, s2, t2, omb_col, s_params, reverse):
    """Fused coupling elementwise math, tiled over rows.

    Returns (y, per-row sum of masked s) — the latter is reduced outside for sldj.
    """
    M, C = x2.shape
    per_row = 2 * 4 * (4 * C + 2)                    # f32 in/out, 2 buffers
    tm = min(4096, max(8, (8 * 1024 * 1024) // max(per_row, 1)))
    tm = max(8, (tm // 8) * 8)
    tm = min(tm, _round_up(M, 8))
    m_pad = _round_up(M, tm)

    def pad(v):
        return jnp.pad(v, ((0, m_pad - M), (0, 0))) if m_pad != M else v

    x2, s2, t2, omb_col = pad(x2), pad(s2), pad(t2), pad(omb_col)

    vspec = pl.BlockSpec((tm, C), lambda i: (i, 0))
    cspec = pl.BlockSpec((tm, 1), lambda i: (i, 0))
    y, rowsum = pl.pallas_call(
        functools.partial(_coupling_kernel, reverse=reverse),
        out_shape=(jax.ShapeDtypeStruct((m_pad, C), jnp.float32),
                   jax.ShapeDtypeStruct((m_pad, 1), jnp.float32)),
        grid=(m_pad // tm,),
        in_specs=[pl.BlockSpec(memory_space=pltpu.MemorySpace.SMEM),
                  vspec, vspec, vspec, cspec],
        out_specs=(vspec, cspec),
        compiler_params=pltpu.CompilerParams(
            dimension_semantics=("parallel",)),
    )(s_params, x2, s2, t2, omb_col)
    return y[:M], rowsum[:M]


# ------------------------------- JAX glue ----------------------------------

def batchnorm(x, gamma=None, beta=None, eps=1e-5):
    """Training-mode BatchNorm2d (batch statistics over N, H, W). x: NHWC."""
    mean = jnp.mean(x, axis=(0, 1, 2), keepdims=True)
    var = jnp.mean(jnp.square(x - mean), axis=(0, 1, 2), keepdims=True)
    y = (x - mean) / jnp.sqrt(var + eps)
    if gamma is not None:
        y = y * gamma.reshape(1, 1, 1, -1) + beta.reshape(1, 1, 1, -1)
    return y


def bn_scale_shift(x, gamma=None, beta=None, eps=1e-5):
    """Per-channel (scale, shift) so BN(x) == x*scale + shift (batch stats)."""
    mean = jnp.mean(x, axis=(0, 1, 2))
    var = jnp.mean(jnp.square(x - mean.reshape(1, 1, 1, -1)), axis=(0, 1, 2))
    scale = 1.0 / jnp.sqrt(var + eps)
    if gamma is not None:
        scale = scale * gamma
    shift = (beta if beta is not None else 0.0) - mean * scale
    return scale, shift


def wnconv(x, p, padding, *, col_scale=None, col_shift=None, fuse_relu=False):
    """Weight-normalized conv (stride 1, 'same' padding) via Pallas matmul."""
    v, g, b = p["v"], p["g"], p["b"]
    cout, cin, kh, kw = v.shape
    vnorm = jnp.sqrt(jnp.sum(v * v, axis=(1, 2, 3), keepdims=True))
    w = (g.reshape(cout, 1, 1, 1) / vnorm) * v          # weight_norm: g * v/||v||
    N, H, W, _ = x.shape
    if kh == 1:
        a = x.reshape(N * H * W, cin)
        wmat = w.reshape(cout, cin).T
        cs, csh = col_scale, col_shift
    else:
        # TODO(synk): im2col is still materialized in HBM; an in-kernel halo
        # gather (Element-offset BlockSpecs) would remove the kh*kw read blow-up.
        assert col_scale is None, "affine prologue only supported for 1x1 convs"
        xp = jnp.pad(x, ((0, 0), (padding, padding), (padding, padding), (0, 0)))
        cols = [xp[:, i:i + H, j:j + W, :] for i in range(kh) for j in range(kw)]
        a = jnp.concatenate(cols, axis=-1).reshape(N * H * W, kh * kw * cin)
        wmat = jnp.transpose(w, (2, 3, 1, 0)).reshape(kh * kw * cin, cout)
        cs = csh = None
    out = matmul_bias(a, wmat, b, col_scale=cs, col_shift=csh,
                      fuse_relu=fuse_relu)
    return out.reshape(N, H, W, cout)


def residual_block(p, x):
    skip = x
    x = batchnorm(x, p["in_norm"]["gamma"], p["in_norm"]["beta"])
    x = wnconv(x, p["in_conv"], padding=1, fuse_relu=True)    # ReLU fused
    x = batchnorm(x, p["out_norm"]["gamma"], p["out_norm"]["beta"])
    x = wnconv(x, p["out_conv"], padding=1, fuse_relu=True)   # ReLU fused
    return x + skip


def st_resnet(p, x, *, input_prerelu=False):
    # The ReLU that the coupling layer applies to the st-net input is fused
    # into in_conv (relu(0)=0 keeps zero padding correct).
    x = wnconv(x, p["in_conv"], padding=1, fuse_relu=input_prerelu)
    x_skip = wnconv(x, p["in_skip"], padding=0)
    for blk, sk in zip(p["blocks"], p["skips"]):
        x = residual_block(blk, x)
        x_skip = x_skip + wnconv(x, sk, padding=0)
    # out_norm + ReLU fused as an affine prologue of the 1x1 out_conv
    sc, sh = bn_scale_shift(x_skip, p["out_norm"]["gamma"], p["out_norm"]["beta"])
    x = wnconv(x_skip, p["out_conv"], padding=0,
               col_scale=sc, col_shift=sh, fuse_relu=True)
    return x


# ---------------------------- parameter init -------------------------------

def init_bn(c):
    return {"gamma": jnp.ones((c,), jnp.float32),
            "beta": jnp.zeros((c,), jnp.float32)}


def init_wnconv(key, cin, cout, k, bias=True, scale=0.1):
    kv, kb = jax.random.split(key)
    v = scale * jax.random.normal(kv, (cout, cin, k, k), jnp.float32)
    g = jnp.sqrt(jnp.sum(v * v, axis=(1, 2, 3)))  # weight_norm default: g = ||v||
    b = (0.01 * jax.random.normal(kb, (cout,), jnp.float32) if bias
         else jnp.zeros((cout,), jnp.float32))
    return {"v": v, "g": g, "b": b}


def init_stresnet(key, cin, mid, cout, num_blocks):
    keys = iter(jax.random.split(key, 3 + 3 * num_blocks))
    p = {"in_conv": init_wnconv(next(keys), cin, mid, 3),
         "in_skip": init_wnconv(next(keys), mid, mid, 1),
         "blocks": [], "skips": []}
    for _ in range(num_blocks):
        p["blocks"].append({
            "in_norm": init_bn(mid),
            "in_conv": init_wnconv(next(keys), mid, mid, 3, bias=False),
            "out_norm": init_bn(mid),
            "out_conv": init_wnconv(next(keys), mid, mid, 3, bias=True),
        })
        p["skips"].append(init_wnconv(next(keys), mid, mid, 1))
    p["out_norm"] = init_bn(mid)
    p["out_conv"] = init_wnconv(next(keys), mid, cout, 1)
    return p


def init_coupling_layer(key, in_channels, mid_channels, num_blocks, mask_type):
    if mask_type == CHECKERBOARD:
        st_in, st_out = 2 * in_channels + 1, 2 * in_channels
    else:
        st_in, st_out = in_channels, in_channels
    return {
        "st_net": init_stresnet(key, st_in, mid_channels, st_out, num_blocks),
        "s_scale": jnp.ones((1,), jnp.float32),
        "s_shift": jnp.zeros((1,), jnp.float32),
    }


# ------------------------------ forward pass -------------------------------

def coupling_layer_forward(params, x_nchw, sldj=None, reverse=True, *,
                           mask_type=CHECKERBOARD, reverse_mask=False):
    x = jnp.transpose(x_nchw, (0, 2, 3, 1)).astype(jnp.float32)   # NCHW -> NHWC
    N, H, W, C = x.shape
    s_params = jnp.concatenate(
        [params["s_scale"].reshape(1), params["s_shift"].reshape(1)]
    ).astype(jnp.float32)

    if mask_type == CHECKERBOARD:
        ii = jnp.arange(H, dtype=jnp.int32).reshape(H, 1)
        jj = jnp.arange(W, dtype=jnp.int32).reshape(1, W)
        b2 = ((ii % 2 + jj) % 2).astype(jnp.float32)
        if reverse_mask:
            b2 = 1.0 - b2
        b = b2.reshape(1, H, W, 1)
        x_b = x * b
        x_b = 2.0 * batchnorm(x_b)                         # st_norm (affine=False)
        b_n = jnp.broadcast_to(b, (N, H, W, 1))
        # ReLU of this concat is fused into the st-net in_conv kernel.
        x_in = jnp.concatenate([x_b, -x_b, b_n], axis=-1)
        st = st_resnet(params["st_net"], x_in, input_prerelu=True)   # (N,H,W,2C)
        s_raw, t_raw = st[..., :C], st[..., C:]
        omb_col = jnp.broadcast_to(1.0 - b, (N, H, W, 1)).reshape(-1, 1)
        y2, rowsum = coupling_apply(x.reshape(-1, C), s_raw.reshape(-1, C),
                                    t_raw.reshape(-1, C), omb_col,
                                    s_params, reverse)
        x_out = y2.reshape(N, H, W, C)
        if not reverse:
            sldj = sldj + rowsum[:, 0].reshape(N, H * W).sum(axis=-1)
    else:  # CHANNEL_WISE
        half = C // 2
        if reverse_mask:
            x_id, x_change = x[..., :half], x[..., half:]
        else:
            x_change, x_id = x[..., :half], x[..., half:]
        st_in = batchnorm(x_id)                            # st_norm (affine=False)
        st_in = jnp.concatenate([st_in, -st_in], axis=-1)  # ReLU fused in in_conv
        st = st_resnet(params["st_net"], st_in, input_prerelu=True)  # (N,H,W,C)
        s_raw, t_raw = st[..., :half], st[..., half:]
        ones_col = jnp.ones((N * H * W, 1), jnp.float32)
        y2, rowsum = coupling_apply(x_change.reshape(-1, half),
                                    s_raw.reshape(-1, half),
                                    t_raw.reshape(-1, half),
                                    ones_col, s_params, reverse)
        x_change = y2.reshape(N, H, W, half)
        if not reverse:
            sldj = sldj + rowsum[:, 0].reshape(N, H * W).sum(axis=-1)
        if reverse_mask:
            x_out = jnp.concatenate([x_id, x_change], axis=-1)
        else:
            x_out = jnp.concatenate([x_change, x_id], axis=-1)

    return jnp.transpose(x_out, (0, 3, 1, 2)), sldj        # back to NCHW


# --------------------------------- main -------------------------------------

if __name__ == "__main__":
    key = jax.random.PRNGKey(0)
    kx, kp = jax.random.split(key)

    in_channels, mid_channels, num_blocks = 4, 32, 2
    x = jax.random.normal(kx, (2, in_channels, 16, 16), jnp.float32)
    params = init_coupling_layer(kp, in_channels, mid_channels, num_blocks,
                                 CHECKERBOARD)

    # default path of the PyTorch forward: reverse=True, sldj unchanged
    y, sldj = coupling_layer_forward(params, x, sldj=None, reverse=True,
                                     mask_type=CHECKERBOARD, reverse_mask=False)
    jax.block_until_ready(y)
    assert y.shape == x.shape and y.dtype == jnp.float32

    # also exercise the forward (non-reverse) branch with log-det accumulation
    y2, sldj2 = coupling_layer_forward(params, x, sldj=jnp.zeros((2,), jnp.float32),
                                       reverse=False, mask_type=CHECKERBOARD,
                                       reverse_mask=True)
    jax.block_until_ready((y2, sldj2))
    assert y2.shape == x.shape and sldj2.shape == (2,)

    print("KERNEL_OK")
</pallas_src>

<mosaic_0001>
module attributes {stable_mosaic.version = 11 : i64} {
  func.func @_mm_kernel(%arg0: i32, %arg1: memref<512x81xbf16, #tpu.memory_space<vmem>>, %arg2: memref<81x32xbf16, #tpu.memory_space<vmem>>, %arg3: memref<1x32xf32, #tpu.memory_space<vmem>>, %arg4: memref<512x32xf32, #tpu.memory_space<vmem>>) attributes {dimension_semantics = [#tpu.dimension_semantics<parallel>], iteration_bounds = array<i64: 1>, scalar_prefetch = 0 : i64, scratch_operands = 0 : i64, tpu.core_type = #tpu.core_type<tc>, window_params = [{transform_indices = @transform_0, window_bounds = array<i64: 512, 81>}, {pipeline_mode = #tpu.pipeline_mode<synchronous>, transform_indices = @transform_1, window_bounds = array<i64: 81, 32>}, {pipeline_mode = #tpu.pipeline_mode<synchronous>, transform_indices = @transform_2, window_bounds = array<i64: 1, 32>}, {transform_indices = @transform_3, window_bounds = array<i64: 512, 32>}]} {
    %c0 = arith.constant 0 : index
    %c0_0 = arith.constant 0 : index
    %0 = vector.load %arg1[%c0, %c0_0] : memref<512x81xbf16, #tpu.memory_space<vmem>>, vector<512x81xbf16>
    %cst = arith.constant 0.000000e+00 : bf16
    %1 = vector.broadcast %cst : bf16 to vector<512x81xbf16>
    %2 = arith.maximumf %0, %1 : vector<512x81xbf16>
    %c0_1 = arith.constant 0 : index
    %c0_2 = arith.constant 0 : index
    %3 = vector.load %arg2[%c0_1, %c0_2] : memref<81x32xbf16, #tpu.memory_space<vmem>>, vector<81x32xbf16>
    %cst_3 = arith.constant dense<0.000000e+00> : vector<512x32xf32>
    %4 = tpu.matmul %2, %3, %cst_3 {dimension_numbers = #tpu.dot_dimension_numbers<[1], [0], [0], [1], [0, 0, 1, 1], [], []>} : vector<512x81xbf16>, vector<81x32xbf16>, vector<512x32xf32> -> vector<512x32xf32>
    %c0_4 = arith.constant 0 : index
    %c0_5 = arith.constant 0 : index
    %5 = vector.load %arg3[%c0_4, %c0_5] : memref<1x32xf32, #tpu.memory_space<vmem>>, vector<1x32xf32>
    %6 = vector.broadcast %5 : vector<1x32xf32> to vector<512x32xf32>
    %7 = arith.addf %4, %6 : vector<512x32xf32>
    %c0_6 = arith.constant 0 : index
    %c0_7 = arith.constant 0 : index
    %8 = vector.load %arg4[%c0_6, %c0_7] : memref<512x32xf32, #tpu.memory_space<vmem>>, vector<512x32xf32>
    tpu.vector_store %arg4[%c0_6, %c0_7], %7 {strides = array<i32>} : memref<512x32xf32, #tpu.memory_space<vmem>>, vector<512x32xf32>,
    return
  }
  func.func @transform_0(%arg0: i32) -> (i32, i32) {
    %c0_i32 = arith.constant 0 : i32
    %c0_i32_0 = arith.constant 0 : i32
    return %arg0, %c0_i32 : i32, i32
  }
  func.func @transform_1(%arg0: i32) -> (i32, i32) {
    %c0_i32 = arith.constant 0 : i32
    %c0_i32_0 = arith.constant 0 : i32
    %c0_i32_1 = arith.constant 0 : i32
    return %c0_i32, %c0_i32_0 : i32, i32
  }
  func.func @transform_2(%arg0: i32) -> (i32, i32) {
    %c0_i32 = arith.constant 0 : i32
    %c0_i32_0 = arith.constant 0 : i32
    %c0_i32_1 = arith.constant 0 : i32
    return %c0_i32, %c0_i32_0 : i32, i32
  }
  func.func @transform_3(%arg0: i32) -> (i32, i32) {
    %c0_i32 = arith.constant 0 : i32
    %c0_i32_0 = arith.constant 0 : i32
    return %arg0, %c0_i32 : i32, i32
  }
}

</mosaic_0001>

<bundles_post_ra>
// kernel: tpu_custom_call.1
= control target key start
LH: loop header
LB: loop body
LE: loop exit
PB: predicated region body
PF: predicated region fallthrough
CT: control target
= control target key end

     0   :  { %v1019_v6 = vmov 0   ;;  %vm451_vm0 = vcmask 1040384   ;;  %vm354_vm1 = vcmask 662528   ;;  %vm746_vm2 = vcmask 261120   ;;  %s1690_s1 = inlined_call_operand.vmem [shape: bf16[81,32], index: 1, kind: input, shape index: {}]   ;;  %s1691_s0 = inlined_call_operand.vmem [shape: bf16[512,81], index: 0, kind: input, shape index: {}]   ;;  %s1692_s2 = inlined_call_operand.vmem [shape: f32[1,32], index: 2, kind: input, shape index: {}]   ;;  %s1693_s3 = inlined_call_operand.vmem [shape: f32[512,32], index: 3, kind: output, shape index: {}]  }
   0x1   :  { %v1013_v0 = vld [vmem:[%s1690_s1] sm:$0xff]   ;;  %v1014_v1 = vld [vmem:[%s1690_s1 + $0x8] sm:$0xff]   ;;  %v1015_v2 = vld [vmem:[%s1690_s1 + $0x10] sm:$0xff]   ;;  %v453_v17 = vsel %vm451_vm0, 65535, %v1019_v6 }
   0x2   :  { %924 = vmatprep.subr.bf16.mxu0 %v1013_v0  ;;  %1000 = vmatprep.subr.bf16.mxu1 %v1013_v0  ;;  %v15_v3 = vld [vmem:[%s1691_s0] sm:$0xf]  ;;  %v16_v4 = vld [vmem:[%s1691_s0 + $0x4] sm:$0xf]  ;;  %v1016_v10 = vld [vmem:[%s1690_s1 + $0x18] sm:$0xff]  }
   0x3   :  { %925 = vmatpush3.bf16.msra.mxu0 %v1013_v0  ;;  %1006 = vmatpush3.bf16.msra.mxu1 %v1013_v0  ;;  %v47_v5 = vld [vmem:[%s1691_s0 + $0x80] sm:$0xf]  ;;  %v79_v7 = vmax.bf16 %v1019_v6, %v15_v3  ;;  %v80_v8 = vmax.bf16 %v1019_v6, %v16_v4  ;;  %v48_v9 = vld [vmem:[%s1691_s0 + $0x84] sm:$0xf]  ;;  %v17_v18 = vld [vmem:[%s1691_s0 + $0x8] sm:$0xf] }
   0x4   :  { %926 = vmatprep.subr.bf16.mxu0 %v1014_v1  ;;  %1001 = vmatprep.subr.bf16.mxu1 %v1014_v1  ;;  %v111_v11 = vmax.bf16 %v1019_v6, %v47_v5  ;;  %v112_v12 = vmax.bf16 %v1019_v6, %v48_v9  ;;  %v1017_v15 = vld [vmem:[%s1690_s1 + $0x20] sm:$0xff]   ;;  %v1018_v16 = vld [vmem:[%s1690_s1 + $0x28] ss:$0 sps:$4 sm:$0x11]   ;;  %v18_v19 = vld [vmem:[%s1691_s0 + $0xc] sm:$0xf]  ;;  %v81_v27 = vmax.bf16 %v1019_v6, %v17_v18 }
   0x5   :  { %v816_v13 = vcombine.low %v79_v7, %v80_v8  ;;  %v49_v20 = vld [vmem:[%s1691_s0 + $0x88] sm:$0xf]  ;;  %v50_v21 = vld [vmem:[%s1691_s0 + $0x8c] sm:$0xf]  ;;  %v19_v22 = vld [vmem:[%s1691_s0 + $0x10] sm:$0xf]  ;;  %v455_v23 = vand.u32 %v1018_v16, %v453_v17  ;;  %v82_v28 = vmax.bf16 %v1019_v6, %v18_v19 }
   0x6   :  { %v832_v14 = vcombine.low %v111_v11, %v112_v12  ;;  %v20_v24 = vld [vmem:[%s1691_s0 + $0x14] sm:$0xf]  ;;  %v51_v25 = vld [vmem:[%s1691_s0 + $0x90] sm:$0xf]  ;;  %v113_v29 = vmax.bf16 %v1019_v6, %v49_v20  ;;  %v114_v30 = vmax.bf16 %v1019_v6, %v50_v21  ;;  %v83_v31 = vmax.bf16 %v1019_v6, %v19_v22  ;;  %v21_v37 = vld [vmem:[%s1691_s0 + $0x18] sm:$0xf] }
   0x7   :  { %927 = vmatpush3.bf16.msra.mxu0 %v1014_v1  ;;  %1007 = vmatpush3.bf16.msra.mxu1 %v1014_v1  ;;  %v52_v26 = vld [vmem:[%s1691_s0 + $0x94] sm:$0xf]  ;;  %v84_v32 = vmax.bf16 %v1019_v6, %v20_v24  ;;  %v115_v33 = vmax.bf16 %v1019_v6, %v51_v25  ;;  %v817_v35 = vcombine.low %v81_v27, %v82_v28  ;;  %v22_v38 = vld [vmem:[%s1691_s0 + $0x1c] sm:$0xf]  ;;  %v53_v41 = vld [vmem:[%s1691_s0 + $0x98] sm:$0xf] }
   0x8   :  { %928 = vmatprep.subr.bf16.mxu0 %v1015_v2  ;;  %1002 = vmatprep.subr.bf16.mxu1 %v1015_v2  ;;  %v116_v34 = vmax.bf16 %v1019_v6, %v52_v26  ;;  %v833_v36 = vcombine.low %v113_v29, %v114_v30  ;;  %v54_v42 = vld [vmem:[%s1691_s0 + $0x9c] sm:$0xf]  ;;  %v23_v43 = vld [vmem:[%s1691_s0 + $0x20] sm:$0xf]  ;;  %v24_v44 = vld [vmem:[%s1691_s0 + $0x24] sm:$0xf]  ;;  %v85_v47 = vmax.bf16 %v1019_v6, %v21_v37 }
   0x9   :  { %936 = vmatprep.mubr.msk.bf16.mxu0 %vm354_vm1, %v816_v13  ;;  %968 = vmatprep.mubr.msk.bf16.mxu1 %vm354_vm1, %v832_v14  ;;  %v818_v39 = vcombine.low %v83_v31, %v84_v32  ;;  %v55_v45 = vld [vmem:[%s1691_s0 + $0xa0] sm:$0xf]  ;;  %v56_v46 = vld [vmem:[%s1691_s0 + $0xa4] sm:$0xf]  ;;  %v86_v48 = vmax.bf16 %v1019_v6, %v22_v38  ;;  %v117_v49 = vmax.bf16 %v1019_v6, %v53_v41  ;;  %v25_v55 = vld [vmem:[%s1691_s0 + $0x28] sm:$0xf] }
   0xa   :  { %v834_v40 = vcombine.low %v115_v33, %v116_v34  ;;  %v118_v50 = vmax.bf16 %v1019_v6, %v54_v42  ;;  %v87_v51 = vmax.bf16 %v1019_v6, %v23_v43  ;;  %v88_v52 = vmax.bf16 %v1019_v6, %v24_v44  ;;  %v26_v56 = vld [vmem:[%s1691_s0 + $0x2c] sm:$0xf]  ;;  %v45_v57 = vld [vmem:[%s1691_s0 + $0x78] sm:$0xf]  ;;  %v46_v58 = vld [vmem:[%s1691_s0 + $0x7c] sm:$0xf] }
   0xb   :  { %929 = vmatpush3.bf16.msra.mxu0 %v1015_v2  ;;  %1008 = vmatpush3.bf16.msra.mxu1 %v1015_v2  ;;  %v119_v53 = vmax.bf16 %v1019_v6, %v55_v45  ;;  %v120_v54 = vmax.bf16 %v1019_v6, %v56_v46  ;;  %v77_v59 = vld [vmem:[%s1691_s0 + $0xf8] sm:$0xf]  ;;  %v819_v60 = vcombine.low %v85_v47, %v86_v48  ;;  %v57_v62 = vld [vmem:[%s1691_s0 + $0xa8] sm:$0xf]  ;;  %v58_v63 = vld [vmem:[%s1691_s0 + $0xac] sm:$0xf] }
   0xc   :  { %930 = vmatprep.subr.bf16.mxu0 %v1016_v10  ;;  %1003 = vmatprep.subr.bf16.mxu1 %v1016_v10  ;;  %v835_v61 = vcombine.low %v117_v49, %v118_v50  ;;  %v78_v0 = vld [vmem:[%s1691_s0 + $0xfc] sm:$0xf]  ;;  %v820_v1 = vcombine.low %v87_v51, %v88_v52  ;;  %v27_v3 = vld [vmem:[%s1691_s0 + $0x30] sm:$0xf]  ;;  %v28_v4 = vld [vmem:[%s1691_s0 + $0x34] sm:$0xf]  ;;  %v89_v5 = vmax.bf16 %v1019_v6, %v25_v55 }
   0xd   :  { %v836_v2 = vcombine.low %v119_v53, %v120_v54  ;;  %v59_v7 = vld [vmem:[%s1691_s0 + $0xb0] sm:$0xf]  ;;  %v60_v8 = vld [vmem:[%s1691_s0 + $0xb4] sm:$0xf]  ;;  %v1183_v9 = vmax.bf16 %v1019_v6, %v45_v57  ;;  %v1189_v11 = vmax.bf16 %v1019_v6, %v77_v59  ;;  %v90_v12 = vmax.bf16 %v1019_v6, %v26_v56  ;;  %v29_v24 = vld [vmem:[%s1691_s0 + $0x38] sm:$0xf] }
   0xe   :  { %v121_v13 = vmax.bf16 %v1019_v6, %v57_v62  ;;  %v122_v14 = vmax.bf16 %v1019_v6, %v58_v63  ;;  %v91_v16 = vmax.bf16 %v1019_v6, %v27_v3  ;;  %v92_v17 = vmax.bf16 %v1019_v6, %v28_v4  ;;  %v30_v25 = vld [vmem:[%s1691_s0 + $0x3c] sm:$0xf]  ;;  %v61_v28 = vld [vmem:[%s1691_s0 + $0xb8] sm:$0xf]  ;;  %v31_v30 = vld [vmem:[%s1691_s0 + $0x40] sm:$0xf] }
   0xf   :  { %931 = vmatpush3.bf16.msra.mxu0 %v1016_v10  ;;  %1009 = vmatpush3.bf16.msra.mxu1 %v1016_v10  ;;  %v1186_v10 = vmax.bf16 %v1019_v6, %v46_v58  ;;  %v123_v19 = vmax.bf16 %v1019_v6, %v59_v7  ;;  %v124_v20 = vmax.bf16 %v1019_v6, %v60_v8  ;;  %v62_v29 = vld [vmem:[%s1691_s0 + $0xbc] sm:$0xf]  ;;  %v32_v31 = vld [vmem:[%s1691_s0 + $0x44] sm:$0xf]  ;;  %v63_v32 = vld [vmem:[%s1691_s0 + $0xc0] sm:$0xf] }
  0x10   :  { %932 = vmatprep.subr.bf16.mxu0 %v1017_v15  ;;  %1004 = vmatprep.subr.bf16.mxu1 %v1017_v15  ;;  %v821_v22 = vcombine.low %v89_v5, %v90_v12  ;;  %v822_v26 = vcombine.low %v91_v16, %v92_v17  ;;  %v64_v33 = vld [vmem:[%s1691_s0 + $0xc4] sm:$0xf]  ;;  %v93_v34 = vmax.bf16 %v1019_v6, %v29_v24  ;;  %v33_v44 = vld [vmem:[%s1691_s0 + $0x48] sm:$0xf]  ;;  %v34_v45 = vld [vmem:[%s1691_s0 + $0x4c] sm:$0xf] }
  0x11   :  { %v831_v18 = vcombine.low %v1183_v9, %v1186_v10  ;;  %v838_v27 = vcombine.low %v123_v19, %v124_v20  ;;  %v126_v37 = vmax.bf16 %v1019_v6, %v62_v29  ;;  %v95_v38 = vmax.bf16 %v1019_v6, %v31_v30  ;;  %v65_v48 = vld [vmem:[%s1691_s0 + $0xc8] sm:$0xf]  ;;  %v66_v49 = vld [vmem:[%s1691_s0 + $0xcc] sm:$0xf]  ;;  %v35_v50 = vld [vmem:[%s1691_s0 + $0x50] sm:$0xf] }
  0x12   :  { %v128_v41 = vmax.bf16 %v1019_v6, %v64_v33  ;;  %v36_v51 = vld [vmem:[%s1691_s0 + $0x54] sm:$0xf]  ;;  %v67_v52 = vld [vmem:[%s1691_s0 + $0xd0] sm:$0xf]  ;;  %v97_v54 = vmax.bf16 %v1019_v6, %v33_v44  ;;  %v98_v55 = vmax.bf16 %v1019_v6, %v34_v45  ;;  %v129_v56 = vmax.bf16 %v1019_v6, %v65_v48  ;;  %v69_v4 = vld [vmem:[%s1691_s0 + $0xd8] sm:$0xf] }
  0x13   :  { %933 = vmatpush3.bf16.msra.mxu0 %v1017_v15  ;;  %1010 = vmatpush3.bf16.msra.mxu1 %v1017_v15  ;;  %v1195_v15 = vmax.bf16 %v1019_v6, %v78_v0  ;;  %v68_v53 = vld [vmem:[%s1691_s0 + $0xd4] sm:$0xf]  ;;  %v130_v57 = vmax.bf16 %v1019_v6, %v66_v49  ;;  %v99_v58 = vmax.bf16 %v1019_v6, %v35_v50  ;;  %v37_v0 = vld [vmem:[%s1691_s0 + $0x58] sm:$0xf]  ;;  %v70_v5 = vld [vmem:[%s1691_s0 + $0xdc] sm:$0xf] }
  0x14   :  { %934 = vmatprep.subr.bf16.mxu0 %v455_v23  ;;  %1005 = vmatprep.subr.bf16.mxu1 %v455_v23  ;;  %v100_v59 = vmax.bf16 %v1019_v6, %v36_v51  ;;  %v825_v62 = vcombine.low %v97_v54, %v98_v55  ;;  %v39_v7 = vld [vmem:[%s1691_s0 + $0x60] sm:$0xf]  ;;  %v40_v8 = vld [vmem:[%s1691_s0 + $0x64] sm:$0xf]  ;;  %v133_v17 = vmax.bf16 %v1019_v6, %v69_v4  ;;  %v43_v33 = vld [vmem:[%s1691_s0 + $0x70] sm:$0xf] }
  0x15   :  { %v847_v21 = vcombine.low %v1189_v11, %v1195_v15  ;;  %v841_v63 = vcombine.low %v129_v56, %v130_v57  ;;  %v71_v12 = vld [vmem:[%s1691_s0 + $0xe0] sm:$0xf]  ;;  %v134_v19 = vmax.bf16 %v1019_v6, %v70_v5  ;;  %v103_v20 = vmax.bf16 %v1019_v6, %v39_v7 }
  0x17   :  { %935 = vmatpush3.bf16.msra.mxu0 %v455_v23  ;;  %1011 = vmatpush3.bf16.msra.mxu1 %v455_v23  ;;  %v837_v23 = vcombine.low %v121_v13, %v122_v14  ;;  %v72_v13 = vld [vmem:[%s1691_s0 + $0xe4] sm:$0xf]  ;;  %v101_v14 = vmax.bf16 %v1019_v6, %v37_v0 }
  0x18   :  { %v136_v24 = vmax.bf16 %v1019_v6, %v72_v13 }
  0x1a   :  { %937 = vmatmul.mubr.msk.bf16.vlgmr.msra.gmra.mrb[0].mxu0 %vm354_vm1, %v817_v35  ;;  %969 = vmatmul.mubr.msk.bf16.vlgmr.msra.gmra.mrb[0].mxu1 %vm354_vm1, %v833_v36  ;;  %v94_v35 = vmax.bf16 %v1019_v6, %v30_v25  ;;  %v125_v36 = vmax.bf16 %v1019_v6, %v61_v28  ;;  %v42_v28 = vld [vmem:[%s1691_s0 + $0x6c] sm:$0xf] }
  0x1b   :  { %940 = vmatprep.mubr.msk.bf16.mxu0 %vm354_vm1, %v818_v39  ;;  %972 = vmatprep.mubr.msk.bf16.mxu1 %vm354_vm1, %v834_v40  ;;  %v96_v39 = vmax.bf16 %v1019_v6, %v32_v31  ;;  %v127_v40 = vmax.bf16 %v1019_v6, %v63_v32  ;;  %v73_v31 = vld [vmem:[%s1691_s0 + $0xe8] sm:$0xf]  ;;  %v74_v32 = vld [vmem:[%s1691_s0 + $0xec] sm:$0xf] }
  0x1c   :  { %v823_v42 = vcombine.low %v93_v34, %v94_v35  ;;  %v839_v43 = vcombine.low %v125_v36, %v126_v37  ;;  %v44_v34 = vld [vmem:[%s1691_s0 + $0x74] sm:$0xf]  ;;  %v75_v35 = vld [vmem:[%s1691_s0 + $0xf0] sm:$0xf] }
  0x1d   :  { %v824_v46 = vcombine.low %v95_v38, %v96_v39  ;;  %v840_v47 = vcombine.low %v127_v40, %v128_v41  ;;  %v76_v36 = vld [vmem:[%s1691_s0 + $0xf4] sm:$0xf]  ;;  %v106_v38 = vmax.bf16 %v1019_v6, %v42_v28  ;;  %v137_v39 = vmax.bf16 %v1019_v6, %v73_v31 }
  0x1e   :  { %v138_v40 = vmax.bf16 %v1019_v6, %v74_v32  ;;  %v107_v41 = vmax.bf16 %v1019_v6, %v43_v33  ;;  %v140_v44 = vmax.bf16 %v1019_v6, %v76_v36 }
  0x22   :  { %941 = vmatmul.mubr.msk.bf16.gmra.mrb[4].mxu0 %vm354_vm1, %v819_v60  ;;  %973 = vmatmul.mubr.msk.bf16.gmra.mrb[4].mxu1 %vm354_vm1, %v835_v61  ;;  %v131_v60 = vmax.bf16 %v1019_v6, %v67_v52  ;;  %v132_v61 = vmax.bf16 %v1019_v6, %v68_v53 }
  0x23   :  { %944 = vmatprep.mubr.msk.bf16.mxu0 %vm354_vm1, %v820_v1  ;;  %976 = vmatprep.mubr.msk.bf16.mxu1 %vm354_vm1, %v836_v2  ;;  %v38_v1 = vld [vmem:[%s1691_s0 + $0x5c] sm:$0xf]  ;;  %v826_v2 = vcombine.low %v99_v58, %v100_v59 }
  0x24   :  { %v842_v3 = vcombine.low %v131_v60, %v132_v61  ;;  %v102_v16 = vmax.bf16 %v1019_v6, %v38_v1 }
  0x26   :  { %v827_v25 = vcombine.low %v101_v14, %v102_v16 }
  0x2a   :  { %945 = vmatmul.mubr.msk.bf16.gmra.mrb[8].mxu0 %vm354_vm1, %v821_v22  ;;  %977 = vmatmul.mubr.msk.bf16.gmra.mrb[8].mxu1 %vm354_vm1, %v837_v23  ;;  %v104_v22 = vmax.bf16 %v1019_v6, %v40_v8  ;;  %v135_v23 = vmax.bf16 %v1019_v6, %v71_v12 }
  0x2b   :  { %948 = vmatprep.mubr.msk.bf16.mxu0 %vm354_vm1, %v822_v26  ;;  %980 = vmatprep.mubr.msk.bf16.mxu1 %vm354_vm1, %v838_v27  ;;  %v843_v26 = vcombine.low %v133_v17, %v134_v19  ;;  %v41_v27 = vld [vmem:[%s1691_s0 + $0x68] sm:$0xf] }
  0x2c   :  { %v828_v29 = vcombine.low %v103_v20, %v104_v22  ;;  %v844_v30 = vcombine.low %v135_v23, %v136_v24  ;;  %v105_v37 = vmax.bf16 %v1019_v6, %v41_v27 }
  0x2e   :  { %v829_v45 = vcombine.low %v105_v37, %v106_v38 }
  0x32   :  { %949 = vmatmul.mubr.msk.bf16.gmra.mrb[12].mxu0 %vm354_vm1, %v823_v42  ;;  %981 = vmatmul.mubr.msk.bf16.gmra.mrb[12].mxu1 %vm354_vm1, %v839_v43  ;;  %v108_v42 = vmax.bf16 %v1019_v6, %v44_v34  ;;  %v139_v43 = vmax.bf16 %v1019_v6, %v75_v35  ;;  %v1368_v6 = vld [vmem:[%s1692_s2] ss:$0 sm:$0xff] }
  0x33   :  { %952 = vmatprep.mubr.msk.bf16.mxu0 %vm354_vm1, %v824_v46  ;;  %984 = vmatprep.mubr.msk.bf16.mxu1 %vm354_vm1, %v840_v47  ;;  %v845_v46 = vcombine.low %v137_v39, %v138_v40 }
  0x34   :  { %v830_v47 = vcombine.low %v107_v41, %v108_v42  ;;  %v846_v48 = vcombine.low %v139_v43, %v140_v44 }
  0x3a   :  { %953 = vmatmul.mubr.msk.bf16.gmra.mrb[16].mxu0 %vm354_vm1, %v825_v62  ;;  %985 = vmatmul.mubr.msk.bf16.gmra.mrb[16].mxu1 %vm354_vm1, %v841_v63 }
  0x3b   :  { %956 = vmatprep.mubr.msk.bf16.mxu0 %vm354_vm1, %v826_v2  ;;  %988 = vmatprep.mubr.msk.bf16.mxu1 %vm354_vm1, %v842_v3 }
  0x42   :  { %957 = vmatmul.mubr.msk.bf16.gmra.mrb[20].mxu0 %vm354_vm1, %v827_v25  ;;  %989 = vmatmul.mubr.msk.bf16.gmra.mrb[20].mxu1 %vm354_vm1, %v843_v26 }
  0x43   :  { %960 = vmatprep.mubr.msk.bf16.mxu0 %vm354_vm1, %v828_v29  ;;  %992 = vmatprep.mubr.msk.bf16.mxu1 %vm354_vm1, %v844_v30 }
  0x4a   :  { %961 = vmatmul.mubr.msk.bf16.gmra.mrb[24].mxu0 %vm354_vm1, %v829_v45  ;;  %993 = vmatmul.mubr.msk.bf16.gmra.mrb[24].mxu1 %vm354_vm1, %v845_v46 }
  0x4b   :  { %964 = vmatprep.mubr.msk.bf16.mxu0 %vm354_vm1, %v830_v47  ;;  %996 = vmatprep.mubr.msk.bf16.mxu1 %vm354_vm1, %v846_v48 }
  0x52   :  { %965 = vmatmul.mubr.msk.bf16.gmra.mrb[28].mxu0 %vm354_vm1, %v831_v18  ;;  %997 = vmatmul.mubr.msk.bf16.gmra.mrb[28].mxu1 %vm354_vm1, %v847_v21 }
  0xed   :  { %v938_v49 = vpop.f32.mrb[0].mxu0  ;;  %v970_v50 = vpop.f32.mrb[0].mxu1 }
  0xee   :  { %v500_v51 = vadd.f32 %v938_v49, %v1368_v6  ;;  %v628_v52 = vadd.f32 %v970_v50, %v1368_v6  ;;  %v491_v9 = vpop.f32.mrb[1].mxu0  ;;  %v619_v10 = vpop.f32.mrb[1].mxu1 }
  0xef   :  { %v492_v18 = vadd.f32 %v1368_v6, %v491_v9  ;;  %v620_v11 = vadd.f32 %v1368_v6, %v619_v10  ;;  %v939_v15 = vpop.f32.mrb[2].mxu0  ;;  %v971_v21 = vpop.f32.mrb[2].mxu1 }
  0xf0   :  { %749 = vst.msk [vmem:[%s1693_s3 + $0x10] sm:$0xff] %vm746_vm2, %v500_v51  ;;  %781 = vst.msk [vmem:[%s1693_s3 + $0x110] sm:$0xff] %vm746_vm2, %v628_v52  ;;  %v503_v53 = vadd.f32 %v939_v15, %v1368_v6  ;;  %v631_v54 = vadd.f32 %v971_v21, %v1368_v6  ;;  %v494_v55 = vpop.f32.mrb[3].mxu0  ;;  %v622_v56 = vpop.f32.mrb[3].mxu1 }
  0xf1   :  { %747 = vst.msk [vmem:[%s1693_s3] sm:$0xff] %vm746_vm2, %v492_v18  ;;  %779 = vst.msk [vmem:[%s1693_s3 + $0x100] sm:$0xff] %vm746_vm2, %v620_v11  ;;  %v495_v57 = vadd.f32 %v1368_v6, %v494_v55  ;;  %v623_v58 = vadd.f32 %v1368_v6, %v622_v56 }
  0xf2   :  { %750 = vst.msk [vmem:[%s1693_s3 + $0x18] sm:$0xff] %vm746_vm2, %v503_v53  ;;  %782 = vst.msk [vmem:[%s1693_s3 + $0x118] sm:$0xff] %vm746_vm2, %v631_v54 }
  0xf3   :  { %748 = vst.msk [vmem:[%s1693_s3 + $0x8] sm:$0xff] %vm746_vm2, %v495_v57  ;;  %780 = vst.msk [vmem:[%s1693_s3 + $0x108] sm:$0xff] %vm746_vm2, %v623_v58 }
  0xf5   :  { %v942_v59 = vpop.f32.mrb[4].mxu0  ;;  %v974_v60 = vpop.f32.mrb[4].mxu1 }
  0xf6   :  { %v516_v61 = vadd.f32 %v942_v59, %v1368_v6  ;;  %v644_v62 = vadd.f32 %v974_v60, %v1368_v6  ;;  %v507_v63 = vpop.f32.mrb[5].mxu0  ;;  %v635_v0 = vpop.f32.mrb[5].mxu1 }
  0xf7   :  { %v508_v1 = vadd.f32 %v1368_v6, %v507_v63  ;;  %v636_v2 = vadd.f32 %v1368_v6, %v635_v0  ;;  %v943_v3 = vpop.f32.mrb[6].mxu0  ;;  %v975_v4 = vpop.f32.mrb[6].mxu1 }
  0xf8   :  { %753 = vst.msk [vmem:[%s1693_s3 + $0x30] sm:$0xff] %vm746_vm2, %v516_v61  ;;  %785 = vst.msk [vmem:[%s1693_s3 + $0x130] sm:$0xff] %vm746_vm2, %v644_v62  ;;  %v519_v5 = vadd.f32 %v943_v3, %v1368_v6  ;;  %v647_v7 = vadd.f32 %v975_v4, %v1368_v6  ;;  %v510_v8 = vpop.f32.mrb[7].mxu0  ;;  %v638_v12 = vpop.f32.mrb[7].mxu1 }
  0xf9   :  { %751 = vst.msk [vmem:[%s1693_s3 + $0x20] sm:$0xff] %vm746_vm2, %v508_v1  ;;  %783 = vst.msk [vmem:[%s1693_s3 + $0x120] sm:$0xff] %vm746_vm2, %v636_v2  ;;  %v511_v13 = vadd.f32 %v1368_v6, %v510_v8  ;;  %v639_v14 = vadd.f32 %v1368_v6, %v638_v12 }
  0xfa   :  { %754 = vst.msk [vmem:[%s1693_s3 + $0x38] sm:$0xff] %vm746_vm2, %v519_v5  ;;  %786 = vst.msk [vmem:[%s1693_s3 + $0x138] sm:$0xff] %vm746_vm2, %v647_v7 }
  0xfb   :  { %752 = vst.msk [vmem:[%s1693_s3 + $0x28] sm:$0xff] %vm746_vm2, %v511_v13  ;;  %784 = vst.msk [vmem:[%s1693_s3 + $0x128] sm:$0xff] %vm746_vm2, %v639_v14 }
  0xfd   :  { %v946_v16 = vpop.f32.mrb[8].mxu0  ;;  %v978_v17 = vpop.f32.mrb[8].mxu1 }
  0xfe   :  { %v532_v19 = vadd.f32 %v946_v16, %v1368_v6  ;;  %v660_v20 = vadd.f32 %v978_v17, %v1368_v6  ;;  %v523_v22 = vpop.f32.mrb[9].mxu0  ;;  %v651_v23 = vpop.f32.mrb[9].mxu1 }
  0xff   :  { %v524_v24 = vadd.f32 %v1368_v6, %v523_v22  ;;  %v652_v25 = vadd.f32 %v1368_v6, %v651_v23  ;;  %v947_v26 = vpop.f32.mrb[10].mxu0  ;;  %v979_v27 = vpop.f32.mrb[10].mxu1 }
 0x100   :  { %757 = vst.msk [vmem:[%s1693_s3 + $0x50] sm:$0xff] %vm746_vm2, %v532_v19  ;;  %789 = vst.msk [vmem:[%s1693_s3 + $0x150] sm:$0xff] %vm746_vm2, %v660_v20  ;;  %v535_v28 = vadd.f32 %v947_v26, %v1368_v6  ;;  %v663_v29 = vadd.f32 %v979_v27, %v1368_v6  ;;  %v526_v30 = vpop.f32.mrb[11].mxu0  ;;  %v654_v31 = vpop.f32.mrb[11].mxu1 }
 0x101   :  { %755 = vst.msk [vmem:[%s1693_s3 + $0x40] sm:$0xff] %vm746_vm2, %v524_v24  ;;  %787 = vst.msk [vmem:[%s1693_s3 + $0x140] sm:$0xff] %vm746_vm2, %v652_v25  ;;  %v527_v32 = vadd.f32 %v1368_v6, %v526_v30  ;;  %v655_v33 = vadd.f32 %v1368_v6, %v654_v31 }
 0x102   :  { %758 = vst.msk [vmem:[%s1693_s3 + $0x58] sm:$0xff] %vm746_vm2, %v535_v28  ;;  %790 = vst.msk [vmem:[%s1693_s3 + $0x158] sm:$0xff] %vm746_vm2, %v663_v29 }
 0x103   :  { %756 = vst.msk [vmem:[%s1693_s3 + $0x48] sm:$0xff] %vm746_vm2, %v527_v32  ;;  %788 = vst.msk [vmem:[%s1693_s3 + $0x148] sm:$0xff] %vm746_vm2, %v655_v33 }
 0x105   :  { %v950_v34 = vpop.f32.mrb[12].mxu0  ;;  %v982_v35 = vpop.f32.mrb[12].mxu1 }
 0x106   :  { %v548_v36 = vadd.f32 %v950_v34, %v1368_v6  ;;  %v676_v37 = vadd.f32 %v982_v35, %v1368_v6  ;;  %v539_v38 = vpop.f32.mrb[13].mxu0  ;;  %v667_v39 = vpop.f32.mrb[13].mxu1 }
 0x107   :  { %v540_v40 = vadd.f32 %v1368_v6, %v539_v38  ;;  %v668_v41 = vadd.f32 %v1368_v6, %v667_v39  ;;  %v951_v42 = vpop.f32.mrb[14].mxu0  ;;  %v983_v43 = vpop.f32.mrb[14].mxu1 }
 0x108   :  { %761 = vst.msk [vmem:[%s1693_s3 + $0x70] sm:$0xff] %vm746_vm2, %v548_v36  ;;  %793 = vst.msk [vmem:[%s1693_s3 + $0x170] sm:$0xff] %vm746_vm2, %v676_v37  ;;  %v551_v44 = vadd.f32 %v951_v42, %v1368_v6  ;;  %v679_v45 = vadd.f32 %v983_v43, %v1368_v6  ;;  %v542_v46 = vpop.f32.mrb[15].mxu0  ;;  %v670_v47 = vpop.f32.mrb[15].mxu1 }
 0x109   :  { %759 = vst.msk [vmem:[%s1693_s3 + $0x60] sm:$0xff] %vm746_vm2, %v540_v40  ;;  %791 = vst.msk [vmem:[%s1693_s3 + $0x160] sm:$0xff] %vm746_vm2, %v668_v41  ;;  %v543_v48 = vadd.f32 %v1368_v6, %v542_v46  ;;  %v671_v49 = vadd.f32 %v1368_v6, %v670_v47 }
 0x10a   :  { %762 = vst.msk [vmem:[%s1693_s3 + $0x78] sm:$0xff] %vm746_vm2, %v551_v44  ;;  %794 = vst.msk [vmem:[%s1693_s3 + $0x178] sm:$0xff] %vm746_vm2, %v679_v45 }
 0x10b   :  { %760 = vst.msk [vmem:[%s1693_s3 + $0x68] sm:$0xff] %vm746_vm2, %v543_v48  ;;  %792 = vst.msk [vmem:[%s1693_s3 + $0x168] sm:$0xff] %vm746_vm2, %v671_v49 }
 0x10d   :  { %v954_v50 = vpop.f32.mrb[16].mxu0  ;;  %v986_v51 = vpop.f32.mrb[16].mxu1 }
 0x10e   :  { %v564_v52 = vadd.f32 %v954_v50, %v1368_v6  ;;  %v692_v9 = vadd.f32 %v986_v51, %v1368_v6  ;;  %v555_v10 = vpop.f32.mrb[17].mxu0  ;;  %v683_v18 = vpop.f32.mrb[17].mxu1 }
 0x10f   :  { %v556_v11 = vadd.f32 %v1368_v6, %v555_v10  ;;  %v684_v15 = vadd.f32 %v1368_v6, %v683_v18  ;;  %v955_v21 = vpop.f32.mrb[18].mxu0  ;;  %v987_v53 = vpop.f32.mrb[18].mxu1 }
 0x110   :  { %765 = vst.msk [vmem:[%s1693_s3 + $0x90] sm:$0xff] %vm746_vm2, %v564_v52  ;;  %797 = vst.msk [vmem:[%s1693_s3 + $0x190] sm:$0xff] %vm746_vm2, %v692_v9  ;;  %v567_v54 = vadd.f32 %v955_v21, %v1368_v6  ;;  %v695_v55 = vadd.f32 %v987_v53, %v1368_v6  ;;  %v558_v56 = vpop.f32.mrb[19].mxu0  ;;  %v686_v57 = vpop.f32.mrb[19].mxu1 }
 0x111   :  { %763 = vst.msk [vmem:[%s1693_s3 + $0x80] sm:$0xff] %vm746_vm2, %v556_v11  ;;  %795 = vst.msk [vmem:[%s1693_s3 + $0x180] sm:$0xff] %vm746_vm2, %v684_v15  ;;  %v559_v58 = vadd.f32 %v1368_v6, %v558_v56  ;;  %v687_v59 = vadd.f32 %v1368_v6, %v686_v57 }
 0x112   :  { %766 = vst.msk [vmem:[%s1693_s3 + $0x98] sm:$0xff] %vm746_vm2, %v567_v54  ;;  %798 = vst.msk [vmem:[%s1693_s3 + $0x198] sm:$0xff] %vm746_vm2, %v695_v55 }
 0x113   :  { %764 = vst.msk [vmem:[%s1693_s3 + $0x88] sm:$0xff] %vm746_vm2, %v559_v58  ;;  %796 = vst.msk [vmem:[%s1693_s3 + $0x188] sm:$0xff] %vm746_vm2, %v687_v59 }
 0x115   :  { %v958_v60 = vpop.f32.mrb[20].mxu0  ;;  %v990_v61 = vpop.f32.mrb[20].mxu1 }
 0x116   :  { %v580_v62 = vadd.f32 %v958_v60, %v1368_v6  ;;  %v708_v63 = vadd.f32 %v990_v61, %v1368_v6  ;;  %v571_v0 = vpop.f32.mrb[21].mxu0  ;;  %v699_v1 = vpop.f32.mrb[21].mxu1 }
 0x117   :  { %v572_v2 = vadd.f32 %v1368_v6, %v571_v0  ;;  %v700_v3 = vadd.f32 %v1368_v6, %v699_v1  ;;  %v959_v4 = vpop.f32.mrb[22].mxu0  ;;  %v991_v5 = vpop.f32.mrb[22].mxu1 }
 0x118   :  { %769 = vst.msk [vmem:[%s1693_s3 + $0xb0] sm:$0xff] %vm746_vm2, %v580_v62  ;;  %801 = vst.msk [vmem:[%s1693_s3 + $0x1b0] sm:$0xff] %vm746_vm2, %v708_v63  ;;  %v583_v7 = vadd.f32 %v959_v4, %v1368_v6  ;;  %v711_v8 = vadd.f32 %v991_v5, %v1368_v6  ;;  %v574_v12 = vpop.f32.mrb[23].mxu0  ;;  %v702_v13 = vpop.f32.mrb[23].mxu1 }
 0x119   :  { %767 = vst.msk [vmem:[%s1693_s3 + $0xa0] sm:$0xff] %vm746_vm2, %v572_v2  ;;  %799 = vst.msk [vmem:[%s1693_s3 + $0x1a0] sm:$0xff] %vm746_vm2, %v700_v3  ;;  %v575_v14 = vadd.f32 %v1368_v6, %v574_v12  ;;  %v703_v16 = vadd.f32 %v1368_v6, %v702_v13 }
 0x11a   :  { %770 = vst.msk [vmem:[%s1693_s3 + $0xb8] sm:$0xff] %vm746_vm2, %v583_v7  ;;  %802 = vst.msk [vmem:[%s1693_s3 + $0x1b8] sm:$0xff] %vm746_vm2, %v711_v8 }
 0x11b   :  { %768 = vst.msk [vmem:[%s1693_s3 + $0xa8] sm:$0xff] %vm746_vm2, %v575_v14  ;;  %800 = vst.msk [vmem:[%s1693_s3 + $0x1a8] sm:$0xff] %vm746_vm2, %v703_v16 }
 0x11d   :  { %v962_v17 = vpop.f32.mrb[24].mxu0  ;;  %v994_v19 = vpop.f32.mrb[24].mxu1 }
 0x11e   :  { %v596_v20 = vadd.f32 %v962_v17, %v1368_v6  ;;  %v724_v22 = vadd.f32 %v994_v19, %v1368_v6  ;;  %v587_v23 = vpop.f32.mrb[25].mxu0  ;;  %v715_v24 = vpop.f32.mrb[25].mxu1 }
 0x11f   :  { %v588_v25 = vadd.f32 %v1368_v6, %v587_v23  ;;  %v716_v26 = vadd.f32 %v1368_v6, %v715_v24  ;;  %v963_v27 = vpop.f32.mrb[26].mxu0  ;;  %v995_v28 = vpop.f32.mrb[26].mxu1 }
 0x120   :  { %773 = vst.msk [vmem:[%s1693_s3 + $0xd0] sm:$0xff] %vm746_vm2, %v596_v20  ;;  %805 = vst.msk [vmem:[%s1693_s3 + $0x1d0] sm:$0xff] %vm746_vm2, %v724_v22  ;;  %v599_v29 = vadd.f32 %v963_v27, %v1368_v6  ;;  %v727_v30 = vadd.f32 %v995_v28, %v1368_v6  ;;  %v590_v31 = vpop.f32.mrb[27].mxu0  ;;  %v718_v32 = vpop.f32.mrb[27].mxu1 }
 0x121   :  { %771 = vst.msk [vmem:[%s1693_s3 + $0xc0] sm:$0xff] %vm746_vm2, %v588_v25  ;;  %803 = vst.msk [vmem:[%s1693_s3 + $0x1c0] sm:$0xff] %vm746_vm2, %v716_v26  ;;  %v591_v33 = vadd.f32 %v1368_v6, %v590_v31  ;;  %v719_v34 = vadd.f32 %v1368_v6, %v718_v32 }
 0x122   :  { %774 = vst.msk [vmem:[%s1693_s3 + $0xd8] sm:$0xff] %vm746_vm2, %v599_v29  ;;  %806 = vst.msk [vmem:[%s1693_s3 + $0x1d8] sm:$0xff] %vm746_vm2, %v727_v30 }
 0x123   :  { %772 = vst.msk [vmem:[%s1693_s3 + $0xc8] sm:$0xff] %vm746_vm2, %v591_v33  ;;  %804 = vst.msk [vmem:[%s1693_s3 + $0x1c8] sm:$0xff] %vm746_vm2, %v719_v34 }
 0x125   :  { %v966_v35 = vpop.f32.mrb[28].mxu0  ;;  %v998_v36 = vpop.f32.mrb[28].mxu1 }
 0x126   :  { %v612_v37 = vadd.f32 %v966_v35, %v1368_v6  ;;  %v740_v38 = vadd.f32 %v998_v36, %v1368_v6  ;;  %v603_v39 = vpop.f32.mrb[29].mxu0  ;;  %v731_v40 = vpop.f32.mrb[29].mxu1 }
 0x127   :  { %v604_v41 = vadd.f32 %v1368_v6, %v603_v39  ;;  %v732_v42 = vadd.f32 %v1368_v6, %v731_v40  ;;  %v967_v43 = vpop.f32.mrb[30].mxu0  ;;  %v999_v44 = vpop.f32.mrb[30].mxu1 }
 0x128   :  { %777 = vst.msk [vmem:[%s1693_s3 + $0xf0] sm:$0xff] %vm746_vm2, %v612_v37  ;;  %809 = vst.msk [vmem:[%s1693_s3 + $0x1f0] sm:$0xff] %vm746_vm2, %v740_v38  ;;  %v615_v45 = vadd.f32 %v967_v43, %v1368_v6  ;;  %v743_v46 = vadd.f32 %v999_v44, %v1368_v6  ;;  %v606_v47 = vpop.f32.mrb[31].mxu0  ;;  %v734_v48 = vpop.f32.mrb[31].mxu1 }
 0x129   :  { %775 = vst.msk [vmem:[%s1693_s3 + $0xe0] sm:$0xff] %vm746_vm2, %v604_v41  ;;  %807 = vst.msk [vmem:[%s1693_s3 + $0x1e0] sm:$0xff] %vm746_vm2, %v732_v42  ;;  %v607_v49 = vadd.f32 %v1368_v6, %v606_v47  ;;  %v735_v50 = vadd.f32 %v1368_v6, %v734_v48 }
 0x12a   :  { %778 = vst.msk [vmem:[%s1693_s3 + $0xf8] sm:$0xff] %vm746_vm2, %v615_v45  ;;  %810 = vst.msk [vmem:[%s1693_s3 + $0x1f8] sm:$0xff] %vm746_vm2, %v743_v46 }
 0x12b   :  { %776 = vst.msk [vmem:[%s1693_s3 + $0xe8] sm:$0xff] %vm746_vm2, %v607_v49  ;;  %808 = vst.msk [vmem:[%s1693_s3 + $0x1e8] sm:$0xff] %vm746_vm2, %v735_v50 }

</bundles_post_ra>
